<compile_context>
chip_gen: v7x
topology: tpu7x:2x2x1
jax: 0.10.0
libtpu: 0.0.40
codegen_flags: <defaults>
</compile_context>

<pallas_src>
import functools

import jax
import jax.numpy as jnp
from jax.experimental import pallas as pl
from jax.experimental.pallas import tpu as pltpu

NEG_SLOPE = 0.01   # torch.nn.LeakyReLU default
LANE = 128
SUBLANE = 8
MAX_BLOCK_B = 512  # measured ~85% of HBM roofline for streaming f32 on v6e


def _leaky_relu(x):
    return jnp.where(x > 0, x, NEG_SLOPE * x)


def _round_up(n, m):
    return ((n + m - 1) // m) * m


def _make_mlp_kernel(n_layers):
    """Kernel computing the whole MLP for one batch tile (refs: x, (w,b)*L, out)."""

    def kernel(*refs):
        x_ref = refs[0]
        o_ref = refs[-1]
        p_refs = refs[1:-1]

        h = x_ref[...]
        for i in range(n_layers):
            w_ref = p_refs[2 * i]
            b_ref = p_refs[2 * i + 1]
            # bf16 (or f32) MXU operands, f32 accumulation.
            h = jnp.dot(h.astype(w_ref.dtype), w_ref[...],
                        preferred_element_type=jnp.float32)
            h = h + b_ref[...]               # bias + activation kept in f32
            if i != n_layers - 1:
                h = _leaky_relu(h)
        o_ref[...] = h.astype(o_ref.dtype)

    return kernel


@functools.partial(jax.jit, static_argnames=("use_bf16", "block_b"))
def network_forward(x, params, *, use_bf16=True, block_b=None):
    """Forward pass of Network. `params` = (w1, b1, w2, b2, ...), w_i: (in, out)."""
    params = list(params)
    n_layers = len(params) // 2
    B = x.shape[0]
    d_out = params[-2].shape[1]

    # ---- lane-dense output: zero-pad last layer to a multiple of 128 lanes ----
    d_out_p = _round_up(d_out, LANE)
    if d_out_p != d_out:
        params[-2] = jnp.pad(params[-2], ((0, 0), (0, d_out_p - d_out)))
        params[-1] = jnp.pad(params[-1], ((0, 0), (0, d_out_p - d_out)))

    # ---- batch tile: as large as possible (sublane aligned, capped) ----------
    Bp = _round_up(B, SUBLANE)
    if block_b is None:
        block_b = Bp if Bp <= MAX_BLOCK_B else MAX_BLOCK_B
    Bp = _round_up(Bp, block_b)
    if Bp != B:
        x = jnp.pad(x, ((0, Bp - B), (0, 0)))

    # ---- bf16 MXU operands (weights + activations), biases stay f32 ----------
    compute_dtype = jnp.bfloat16 if use_bf16 else jnp.float32
    x = x.astype(compute_dtype)
    weights = [w.astype(compute_dtype) for w in params[0::2]]
    biases = [b.astype(jnp.float32) for b in params[1::2]]

    flat_params = []
    in_specs = [pl.BlockSpec((block_b, x.shape[1]), lambda i: (i, 0))]
    flops = 0
    bytes_accessed = x.size * x.dtype.itemsize
    for w, b in zip(weights, biases):
        flat_params += [w, b]
        # Constant index_map -> blocks stay VMEM-resident across grid steps.
        in_specs += [
            pl.BlockSpec(w.shape, lambda i: (0, 0),
                         memory_space=pltpu.MemorySpace.VMEM),
            pl.BlockSpec(b.shape, lambda i: (0, 0),
                         memory_space=pltpu.MemorySpace.VMEM),
        ]
        flops += 2 * Bp * w.shape[0] * w.shape[1]
        bytes_accessed += w.size * w.dtype.itemsize + b.size * b.dtype.itemsize
    bytes_accessed += Bp * d_out_p * 4  # f32 output

    grid = (Bp // block_b,)

    out = pl.pallas_call(
        _make_mlp_kernel(n_layers),
        out_shape=jax.ShapeDtypeStruct((Bp, d_out_p), jnp.float32),
        grid=grid,
        in_specs=in_specs,
        out_specs=pl.BlockSpec((block_b, d_out_p), lambda i: (i, 0)),
        compiler_params=pltpu.CompilerParams(
            dimension_semantics=("parallel",),
        ),
        cost_estimate=pl.CostEstimate(
            flops=flops, transcendentals=0, bytes_accessed=bytes_accessed),
    )(x, *flat_params)

    # Drop batch padding and the zero-padded output lanes.
    return out[:B, :d_out]


def init_params(key, dims_in, dims_out):
    """Deterministic init mimicking nn.Linear's U(-1/sqrt(fan_in), 1/sqrt(fan_in))."""
    assert dims_out[:-1] == dims_in[1:], "Dimension of subsequent layer not matching"
    params = []
    for d_in, d_out in zip(dims_in, dims_out):
        key, kw, kb = jax.random.split(key, 3)
        bound = 1.0 / (d_in ** 0.5)
        # stored as (in, out): y = x @ W + b  (== PyTorch's x @ W_pt.T + b)
        w = jax.random.uniform(kw, (d_in, d_out), jnp.float32, -bound, bound)
        b = jax.random.uniform(kb, (1, d_out), jnp.float32, -bound, bound)
        params.extend([w, b])
    return params


def reference_forward(x, params):
    """Pure-JAX f32 reference of Network.forward for verification."""
    n_layers = len(params) // 2
    h = x
    for i in range(n_layers):
        w, b = params[2 * i], params[2 * i + 1]
        h = h @ w + b
        if i != n_layers - 1:
            h = _leaky_relu(h)
    return h


if __name__ == "__main__":
    # Network(dims_in=[16, 32, 32], dims_out=[32, 32, 8]) -> 3 Linear layers.
    dims_in = [16, 32, 32]
    dims_out = [32, 32, 8]
    batch = 16

    key = jax.random.PRNGKey(0)
    key, kx = jax.random.split(key)
    x = jax.random.normal(kx, (batch, dims_in[0]), dtype=jnp.float32)

    params = init_params(key, dims_in, dims_out)
    ref = reference_forward(x, params)

    # Exact-semantics path (f32 MXU operands) -- tight tolerance.
    out_f32 = jax.block_until_ready(
        network_forward(x, tuple(params), use_bf16=False))
    assert out_f32.shape == (batch, dims_out[-1])
    assert jnp.allclose(out_f32, ref, atol=1e-5, rtol=1e-5)

    # Fast path (bf16 MXU operands, f32 accumulation) -- loosened tolerance.
    out_bf16 = jax.block_until_ready(
        network_forward(x, tuple(params), use_bf16=True))
    assert out_bf16.shape == (batch, dims_out[-1])
    assert jnp.allclose(out_bf16, ref, atol=5e-2, rtol=5e-2)

    print("KERNEL_OK")
</pallas_src>

<mosaic_0001>
module attributes {stable_mosaic.version = 11 : i64} {
  func.func @kernel(%arg0: i32, %arg1: memref<16x16xf32, #tpu.memory_space<vmem>>, %arg2: memref<16x32xf32, #tpu.memory_space<vmem>>, %arg3: memref<1x32xf32, #tpu.memory_space<vmem>>, %arg4: memref<32x32xf32, #tpu.memory_space<vmem>>, %arg5: memref<1x32xf32, #tpu.memory_space<vmem>>, %arg6: memref<32x128xf32, #tpu.memory_space<vmem>>, %arg7: memref<1x128xf32, #tpu.memory_space<vmem>>, %arg8: memref<16x128xf32, #tpu.memory_space<vmem>>) attributes {dimension_semantics = [#tpu.dimension_semantics<parallel>], iteration_bounds = array<i64: 1>, scalar_prefetch = 0 : i64, scratch_operands = 0 : i64, tpu.core_type = #tpu.core_type<tc>, window_params = [{transform_indices = @transform_0, window_bounds = array<i64: 16, 16>}, {pipeline_mode = #tpu.pipeline_mode<synchronous>, transform_indices = @transform_1, window_bounds = array<i64: 16, 32>}, {pipeline_mode = #tpu.pipeline_mode<synchronous>, transform_indices = @transform_2, window_bounds = array<i64: 1, 32>}, {pipeline_mode = #tpu.pipeline_mode<synchronous>, transform_indices = @transform_3, window_bounds = array<i64: 32, 32>}, {pipeline_mode = #tpu.pipeline_mode<synchronous>, transform_indices = @transform_4, window_bounds = array<i64: 1, 32>}, {pipeline_mode = #tpu.pipeline_mode<synchronous>, transform_indices = @transform_5, window_bounds = array<i64: 32, 128>}, {pipeline_mode = #tpu.pipeline_mode<synchronous>, transform_indices = @transform_6, window_bounds = array<i64: 1, 128>}, {transform_indices = @transform_7, window_bounds = array<i64: 16, 128>}]} {
    %c0 = arith.constant 0 : index
    %c0_0 = arith.constant 0 : index
    %0 = vector.load %arg1[%c0, %c0_0] : memref<16x16xf32, #tpu.memory_space<vmem>>, vector<16x16xf32>
    %c0_1 = arith.constant 0 : index
    %c0_2 = arith.constant 0 : index
    %1 = vector.load %arg2[%c0_1, %c0_2] : memref<16x32xf32, #tpu.memory_space<vmem>>, vector<16x32xf32>
    %cst = arith.constant dense<0.000000e+00> : vector<16x32xf32>
    %2 = tpu.matmul %0, %1, %cst {dimension_numbers = #tpu.dot_dimension_numbers<[1], [0], [0], [1], [0, 0, 1, 1], [], []>} : vector<16x16xf32>, vector<16x32xf32>, vector<16x32xf32> -> vector<16x32xf32>
    %c0_3 = arith.constant 0 : index
    %c0_4 = arith.constant 0 : index
    %3 = vector.load %arg3[%c0_3, %c0_4] : memref<1x32xf32, #tpu.memory_space<vmem>>, vector<1x32xf32>
    %4 = vector.broadcast %3 : vector<1x32xf32> to vector<16x32xf32>
    %5 = arith.addf %2, %4 : vector<16x32xf32>
    %cst_5 = arith.constant 0.000000e+00 : f32
    %6 = vector.broadcast %cst_5 : f32 to vector<16x32xf32>
    %7 = arith.cmpf ogt, %5, %6 : vector<16x32xf32>
    %cst_6 = arith.constant 0.00999999977 : f32
    %8 = vector.broadcast %cst_6 : f32 to vector<16x32xf32>
    %9 = arith.mulf %8, %5 : vector<16x32xf32>
    %10 = arith.select %7, %5, %9 : vector<16x32xi1>, vector<16x32xf32>
    %c0_7 = arith.constant 0 : index
    %c0_8 = arith.constant 0 : index
    %11 = vector.load %arg4[%c0_7, %c0_8] : memref<32x32xf32, #tpu.memory_space<vmem>>, vector<32x32xf32>
    %cst_9 = arith.constant dense<0.000000e+00> : vector<16x32xf32>
    %12 = tpu.matmul %10, %11, %cst_9 {dimension_numbers = #tpu.dot_dimension_numbers<[1], [0], [0], [1], [0, 0, 1, 1], [], []>} : vector<16x32xf32>, vector<32x32xf32>, vector<16x32xf32> -> vector<16x32xf32>
    %c0_10 = arith.constant 0 : index
    %c0_11 = arith.constant 0 : index
    %13 = vector.load %arg5[%c0_10, %c0_11] : memref<1x32xf32, #tpu.memory_space<vmem>>, vector<1x32xf32>
    %14 = vector.broadcast %13 : vector<1x32xf32> to vector<16x32xf32>
    %15 = arith.addf %12, %14 : vector<16x32xf32>
    %cst_12 = arith.constant 0.000000e+00 : f32
    %16 = vector.broadcast %cst_12 : f32 to vector<16x32xf32>
    %17 = arith.cmpf ogt, %15, %16 : vector<16x32xf32>
    %cst_13 = arith.constant 0.00999999977 : f32
    %18 = vector.broadcast %cst_13 : f32 to vector<16x32xf32>
    %19 = arith.mulf %18, %15 : vector<16x32xf32>
    %20 = arith.select %17, %15, %19 : vector<16x32xi1>, vector<16x32xf32>
    %c0_14 = arith.constant 0 : index
    %c0_15 = arith.constant 0 : index
    %21 = vector.load %arg6[%c0_14, %c0_15] : memref<32x128xf32, #tpu.memory_space<vmem>>, vector<32x128xf32>
    %cst_16 = arith.constant dense<0.000000e+00> : vector<16x128xf32>
    %22 = tpu.matmul %20, %21, %cst_16 {dimension_numbers = #tpu.dot_dimension_numbers<[1], [0], [0], [1], [0, 0, 1, 1], [], []>} : vector<16x32xf32>, vector<32x128xf32>, vector<16x128xf32> -> vector<16x128xf32>
    %c0_17 = arith.constant 0 : index
    %c0_18 = arith.constant 0 : index
    %23 = vector.load %arg7[%c0_17, %c0_18] : memref<1x128xf32, #tpu.memory_space<vmem>>, vector<1x128xf32>
    %24 = vector.broadcast %23 : vector<1x128xf32> to vector<16x128xf32>
    %25 = arith.addf %22, %24 : vector<16x128xf32>
    %c0_19 = arith.constant 0 : index
    %c0_20 = arith.constant 0 : index
    %26 = vector.load %arg8[%c0_19, %c0_20] : memref<16x128xf32, #tpu.memory_space<vmem>>, vector<16x128xf32>
    tpu.vector_store %arg8[%c0_19, %c0_20], %25 {strides = array<i32>} : memref<16x128xf32, #tpu.memory_space<vmem>>, vector<16x128xf32>,
    return
  }
  func.func @transform_0(%arg0: i32) -> (i32, i32) {
    %c0_i32 = arith.constant 0 : i32
    %c0_i32_0 = arith.constant 0 : i32
    return %arg0, %c0_i32 : i32, i32
  }
  func.func @transform_1(%arg0: i32) -> (i32, i32) {
    %c0_i32 = arith.constant 0 : i32
    %c0_i32_0 = arith.constant 0 : i32
    %c0_i32_1 = arith.constant 0 : i32
    return %c0_i32, %c0_i32_0 : i32, i32
  }
  func.func @transform_2(%arg0: i32) -> (i32, i32) {
    %c0_i32 = arith.constant 0 : i32
    %c0_i32_0 = arith.constant 0 : i32
    %c0_i32_1 = arith.constant 0 : i32
    return %c0_i32, %c0_i32_0 : i32, i32
  }
  func.func @transform_3(%arg0: i32) -> (i32, i32) {
    %c0_i32 = arith.constant 0 : i32
    %c0_i32_0 = arith.constant 0 : i32
    %c0_i32_1 = arith.constant 0 : i32
    return %c0_i32, %c0_i32_0 : i32, i32
  }
  func.func @transform_4(%arg0: i32) -> (i32, i32) {
    %c0_i32 = arith.constant 0 : i32
    %c0_i32_0 = arith.constant 0 : i32
    %c0_i32_1 = arith.constant 0 : i32
    return %c0_i32, %c0_i32_0 : i32, i32
  }
  func.func @transform_5(%arg0: i32) -> (i32, i32) {
    %c0_i32 = arith.constant 0 : i32
    %c0_i32_0 = arith.constant 0 : i32
    %c0_i32_1 = arith.constant 0 : i32
    return %c0_i32, %c0_i32_0 : i32, i32
  }
  func.func @transform_6(%arg0: i32) -> (i32, i32) {
    %c0_i32 = arith.constant 0 : i32
    %c0_i32_0 = arith.constant 0 : i32
    %c0_i32_1 = arith.constant 0 : i32
    return %c0_i32, %c0_i32_0 : i32, i32
  }
  func.func @transform_7(%arg0: i32) -> (i32, i32) {
    %c0_i32 = arith.constant 0 : i32
    %c0_i32_0 = arith.constant 0 : i32
    return %arg0, %c0_i32 : i32, i32
  }
}

</mosaic_0001>

<bundles_post_ra>
// kernel: network_forward.1
= control target key start
LH: loop header
LB: loop body
LE: loop exit
PB: predicated region body
PF: predicated region fallthrough
CT: control target
= control target key end

     0   :  { %vm37_vm0 = vcmask 130048   ;;  %vm136_vm3 = vcmask 261120   ;;  %s491_s1 = inlined_call_operand.vmem [shape: f32[16,32], index: 1, kind: input, shape index: {}]   ;;  %s492_s0 = inlined_call_operand.vmem [shape: f32[16,16], index: 0, kind: input, shape index: {}]   ;;  %s493_s3 = inlined_call_operand.vmem [shape: f32[32,32], index: 3, kind: input, shape index: {}]   ;;  %s494_s2 = inlined_call_operand.vmem [shape: f32[1,32], index: 2, kind: input, shape index: {}]   ;;  %s495_s5 = inlined_call_operand.vmem [shape: f32[32,128], index: 5, kind: input, shape index: {}]   ;;  %s496_s4 = inlined_call_operand.vmem [shape: f32[1,32], index: 4, kind: input, shape index: {}]   ;;  %s497_s6 = inlined_call_operand.vmem [shape: f32[1,128], index: 6, kind: input, shape index: {}]   ;;  %s498_s7 = inlined_call_operand.vmem [shape: f32[16,128], index: 7, kind: output, shape index: {}]  }
   0x1   :  { %v28_v0 = vld [vmem:[%s491_s1] sm:$0xff]  ;;  %v29_v1 = vld [vmem:[%s491_s1 + $0x8] sm:$0xff]  ;;  %v127_v8 = vld [vmem:[%s493_s3 + $0x10] sm:$0xff] }
   0x2   :  { %v26_v2 = vld [vmem:[%s492_s0] sm:$0xff]  ;;  %v376_v3 = vpack.c.bf16 %v29_v1, %v28_v0  ;;  %v27_v4 = vld [vmem:[%s492_s0 + $0x8] sm:$0xff]  ;;  %v128_v9 = vld [vmem:[%s493_s3 + $0x18] sm:$0xff] }
   0x3   :  { %351 = vmatprep.mubr.msk.f32.mxu0 %vm37_vm0, %v26_v2  ;;  %v125_v5 = vld [vmem:[%s493_s3] sm:$0xff]  ;;  %v126_v6 = vld [vmem:[%s493_s3 + $0x8] sm:$0xff]  ;;  %v384_v10 = vpack.c.bf16 %v128_v9, %v127_v8  ;;  %v226_v23 = vld [vmem:[%s495_s5 + $0x10] sm:$0xff] }
   0x4   :  { %377 = vmatprep.subr.bf16.mxu0 %v376_v3  ;;  %v380_v7 = vpack.c.bf16 %v126_v6, %v125_v5  ;;  %v322_v11 = vld [vmem:[%s494_s2] ss:$0 sm:$0xff]  ;;  %v225_v21 = vld [vmem:[%s495_s5 + $0x8] sm:$0xff]  ;;  %v227_v24 = vld [vmem:[%s495_s5 + $0x18] sm:$0xff] }
   0x5   :  { %379 = vmatpush3.bf16.msra.mxu0 %v376_v3  ;;  %v224_v20 = vld [vmem:[%s495_s5] sm:$0xff]  ;;  %v392_v25 = vpack.c.bf16 %v227_v24, %v226_v23 }
   0x6   :  { %381 = vmatprep.subr.bf16.mxu1 %v380_v7  ;;  %v388_v22 = vpack.c.bf16 %v225_v21, %v224_v20  ;;  %v325_v26 = vld [vmem:[%s496_s4] ss:$0 sm:$0xff] }
   0x7   :  { %383 = vmatpush3.bf16.msra.mxu1 %v380_v7  ;;  %v328_v35 = vld [vmem:[%s497_s6] ss:$0 sm:$0xff] }
   0x8   :  { %352 = vmatmul.mubr.msk.f32.vlgmr.msra.gmra.mrb[0].mxu0 %vm37_vm0, %v27_v4  ;;  %385 = vmatprep.subr.bf16.mxu1 %v384_v10 }
   0x9   :  { %389 = vmatprep.subr.bf16.mxu0 %v388_v22 }
   0xa   :  { %391 = vmatpush3.bf16.msra.mxu0 %v388_v22 }
   0xb   :  { %387 = vmatpush3.bf16.msra.mxu1 %v384_v10  ;;  %393 = vmatprep.subr.bf16.mxu0 %v392_v25 }
   0xe   :  { %395 = vmatpush3.bf16.msra.mxu0 %v392_v25 }
  0xdb   :  { %v353_v12 = vpop.f32.mrb[0].mxu0 }
  0xdc   :  { %v116_v13 = vadd.f32 %v353_v12, %v322_v11  ;;  %v110_v14 = vpop.f32.mrb[1].mxu0 }
  0xdd   :  { %v111_v15 = vadd.f32 %v322_v11, %v110_v14 }
  0xde   :  { %v122_v16 = vmul.f32 0.01, %v116_v13  ;;  %vm120_vm1 = vcmp.gt.f32.partialorder %v116_v13, 0.0 }
  0xdf   :  { %vm119_vm2 = vcmp.gt.f32.partialorder %v111_v15, 0.0  ;;  %v121_v17 = vmul.f32 0.01, %v111_v15 }
  0xe0   :  { %v124_v19 = vsel %vm120_vm1, %v116_v13, %v122_v16 }
  0xe1   :  { %v123_v18 = vsel %vm119_vm2, %v111_v15, %v121_v17 }
  0xe2   :  { %362 = vmatprep.mubr.msk.f32.mxu1 %vm136_vm3, %v123_v18 }
  0xe3   :  { %363 = vmatmul.mubr.msk.f32.vlgmr.msra.gmra.mrb[0].mxu1 %vm136_vm3, %v124_v19 }
 0x1b6   :  { %v364_v27 = vpop.f32.mrb[0].mxu1 }
 0x1b7   :  { %v215_v28 = vadd.f32 %v364_v27, %v325_v26  ;;  %v209_v29 = vpop.f32.mrb[1].mxu1 }
 0x1b8   :  { %v210_v30 = vadd.f32 %v325_v26, %v209_v29 }
 0x1b9   :  { %v221_v31 = vmul.f32 0.01, %v215_v28  ;;  %vm219_vm4 = vcmp.gt.f32.partialorder %v215_v28, 0.0 }
 0x1ba   :  { %vm218_vm5 = vcmp.gt.f32.partialorder %v210_v30, 0.0  ;;  %v220_v32 = vmul.f32 0.01, %v210_v30 }
 0x1bb   :  { %v223_v34 = vsel %vm219_vm4, %v215_v28, %v221_v31 }
 0x1bc   :  { %v222_v33 = vsel %vm218_vm5, %v210_v30, %v220_v32 }
 0x1bd   :  { %373 = vmatprep.mubr.msk.f32.mxu0 %vm136_vm3, %v222_v33 }
 0x1be   :  { %374 = vmatmul.mubr.msk.f32.vlgmr.msra.gmra.mrb[2].mxu0 %vm136_vm3, %v223_v34 }
 0x291   :  { %v375_v36 = vpop.f32.mrb[2].mxu0 }
 0x292   :  { %v313_v37 = vadd.f32 %v375_v36, %v328_v35  ;;  %v307_v38 = vpop.f32.mrb[3].mxu0 }
 0x293   :  { %v308_v39 = vadd.f32 %v328_v35, %v307_v38 }
 0x294   :  { %317 = vst [vmem:[%s498_s7 + $0x8] sm:$0xff] %v313_v37 }
 0x295   :  { %316 = vst [vmem:[%s498_s7] sm:$0xff] %v308_v39 }

</bundles_post_ra>
